<compile_context>
chip_gen: v6e
topology: v6e:2x2x1
jax: 0.10.0
libtpu: 0.0.40
codegen_flags: <defaults>
</compile_context>

<pallas_src>
import functools

import jax
import jax.numpy as jnp
from jax.experimental import pallas as pl
from jax.experimental.pallas import tpu as pltpu

_NEG_LARGE = -1e30  # finite stand-in for -inf (avoids inf-inf NaNs on fully masked tiles)


def _supcon_kernel(anchor_ref, other_ref,            # inputs  (TILE_N, D)
                   m_out, s_out, z_out,              # outputs (1, 1) per partition
                   m_sc, s_sc, z_sc,                 # scratch (1, 1) accumulators
                   *, inv_temperature, tile_rows, tiles_per_part, n_valid, needs_mask):
    p = pl.program_id(0)   # row-partition (parallel; one per TensorCore on multi-TC parts)
    t = pl.program_id(1)   # tile within the partition (online-logsumexp axis)

    @pl.when(t == 0)
    def _init():
        m_sc[...] = jnp.full_like(m_sc, _NEG_LARGE)
        s_sc[...] = jnp.zeros_like(s_sc)
        z_sc[...] = jnp.zeros_like(z_sc)

    a = anchor_ref[...].astype(jnp.float32)           # (TILE_N, D)
    b = other_ref[...].astype(jnp.float32)            # (TILE_N, D)
    # einsum('ij,ij->i') / temperature as a (TILE_N, 1) column.
    sim = jnp.sum(a * b, axis=-1, keepdims=True) * inv_temperature

    # sim[0] (the cross-entropy target logit) lives only in the very first tile.
    @pl.when(jnp.logical_and(p == 0, t == 0))
    def _grab_sim0():
        z_sc[...] = sim[0:1, 0:1]

    def _update(sim_col, valid):
        # Online logsumexp recurrence (rescale running sum when the running max moves).
        m_prev = m_sc[...]
        m_new = jnp.maximum(m_prev, jnp.max(sim_col, axis=0, keepdims=True))
        e = jnp.exp(sim_col - m_new)
        if valid is not None:
            e = jnp.where(valid, e, 0.0)
        s_sc[...] = s_sc[...] * jnp.exp(m_prev - m_new) + jnp.sum(e, axis=0, keepdims=True)
        m_sc[...] = m_new

    if needs_mask:
        # Only ragged / out-of-range tiles pay the iota/compare/where masking work;
        # full tiles take the unmasked path.
        gtile = p * tiles_per_part + t
        is_ragged = (gtile + 1) * tile_rows > n_valid

        @pl.when(is_ragged)
        def _masked_update():
            rows = jax.lax.broadcasted_iota(jnp.int32, sim.shape, 0) + gtile * tile_rows
            valid = rows < n_valid
            _update(jnp.where(valid, sim, _NEG_LARGE), valid)

        @pl.when(jnp.logical_not(is_ragged))
        def _full_update():
            _update(sim, None)
    else:
        _update(sim, None)

    @pl.when(t == pl.num_programs(1) - 1)
    def _finalize():
        m_out[...] = m_sc[...]
        s_out[...] = s_sc[...]
        z_out[...] = z_sc[...]


def supcon_loss_ref(rep_anchor, rep_other, temperature):
    sim = jnp.einsum("ij,ij->i",
                     rep_anchor.astype(jnp.float32),
                     rep_other.astype(jnp.float32)) / temperature
    return jax.nn.logsumexp(sim) - sim[0]


def _tpu_vmem_and_cores():
    """Best-effort (VMEM capacity, TensorCores/chip) query with safe fallbacks."""
    vmem_cap = 64 * 1024 * 1024   # conservative: v7x per-core VMEM
    cores = 1                     # conservative: single-TC (v5e/v6e)
    try:
        info = pltpu.get_tpu_info()
        for name in ("vmem_capacity_bytes", "vmem_bytes", "vmem_size_bytes"):
            v = getattr(info, name, None)
            if v:
                vmem_cap = int(v)
                break
        for name in ("num_cores", "num_tensorcores", "tensorcore_count", "cores_per_chip"):
            c = getattr(info, name, None)
            if c:
                cores = int(c)
                break
    except Exception:
        pass
    return vmem_cap, cores


def supcon_loss_pallas(rep_anchor, rep_other, temperature=0.07,
                       tile_rows=None, num_parts=None, force_pallas=False):
    """SupConLoss forward: logsumexp(rowdot(a, b)/T) - rowdot(a, b)[0]/T."""
    assert rep_anchor.shape == rep_other.shape and rep_anchor.ndim == 2
    n, d = rep_anchor.shape
    itemsize = jnp.dtype(rep_anchor.dtype).itemsize

    # Small-problem fast path: a 1-2 step grid just pays launch + pipeline warm-up;
    # let XLA fuse the tiny case into one pass.
    if not force_pallas and 2 * n * d * itemsize < (4 << 20):
        return supcon_loss_ref(rep_anchor, rep_other, temperature)

    vmem_cap, cores = _tpu_vmem_and_cores()
    # Request ~75% of physical VMEM (=> ~48 MiB on v7x's 64 MiB, ~96 MiB on v5e/v6e's 128).
    vmem_limit = max(16 << 20, int(vmem_cap * 0.75))

    if tile_rows is None:
        # 2 inputs x 2 pipeline buffers should use ~2/3 of the requested limit.
        budget = vmem_limit // 6                      # per-input tile budget
        tile_rows = max(8, (budget // max(d * itemsize, 1)) // 8 * 8)
    tile_rows = max(8, (tile_rows // 8) * 8)          # sublane multiple
    tile_rows = min(tile_rows, max(8, ((n + 7) // 8) * 8))   # don't over-tile tiny inputs

    num_tiles = -(-n // tile_rows)                    # cdiv
    if num_parts is None:
        num_parts = cores                             # 1 on v5e/v6e, 2 on v7x
    num_parts = max(1, min(num_parts, num_tiles))
    tiles_per_part = -(-num_tiles // num_parts)
    while num_parts > 1 and (num_parts - 1) * tiles_per_part >= num_tiles:
        num_parts -= 1                                # every partition must own real tiles
        tiles_per_part = -(-num_tiles // num_parts)

    # NO padding of the reps: ragged/extra tiles are handled by in-kernel masking.
    needs_mask = (num_parts * tiles_per_part * tile_rows) != n

    tile_bytes = tile_rows * d * itemsize
    vmem_limit = int(min(max(vmem_limit, 4 * tile_bytes + (4 << 20)),
                         max(4 * tile_bytes + (4 << 20), int(vmem_cap * 0.85))))

    kernel = functools.partial(
        _supcon_kernel,
        inv_temperature=1.0 / float(temperature),
        tile_rows=tile_rows,
        tiles_per_part=tiles_per_part,
        n_valid=n,
        needs_mask=needs_mask,
    )

    last_block = num_tiles - 1

    def row_map(p, t):
        # Clamp fully-out-of-range tiles onto the last real block (their rows are
        # masked out in-kernel), so the DMA window always stays in bounds.
        return (jnp.minimum(p * tiles_per_part + t, last_block), 0)

    part_spec = pl.BlockSpec((1, 1), lambda p, t: (p, 0))
    part_shape = jax.ShapeDtypeStruct((num_parts, 1), jnp.float32)

    m_p, s_p, z_p = pl.pallas_call(
        kernel,
        out_shape=(part_shape, part_shape, part_shape),
        grid_spec=pltpu.PrefetchScalarGridSpec(
            num_scalar_prefetch=0,
            grid=(num_parts, tiles_per_part),
            in_specs=[
                pl.BlockSpec((tile_rows, d), row_map),   # D kept whole on the lane axis
                pl.BlockSpec((tile_rows, d), row_map),
            ],
            out_specs=[part_spec, part_spec, part_spec],
            scratch_shapes=[pltpu.VMEM((1, 1), jnp.float32)] * 3,
        ),
        compiler_params=pltpu.CompilerParams(
            dimension_semantics=("parallel", "arbitrary"),
            vmem_limit_bytes=vmem_limit,
        ),
        cost_estimate=pl.CostEstimate(
            flops=2 * n * d,
            transcendentals=n,
            bytes_accessed=2 * n * d * itemsize,
        ),
    )(rep_anchor, rep_other)

    # Combine the per-partition logsumexp partials (a handful of scalar ops).
    m_p = m_p[:, 0]
    s_p = s_p[:, 0]
    gmax = jnp.max(m_p)
    total = jnp.sum(s_p * jnp.exp(m_p - gmax))
    return gmax + jnp.log(total) - z_p[0, 0]


def sentence_transformer_stub(params, token_embeddings, attention_mask,
                              out_dtype=jnp.float32):
    """Deterministic stand-in for SentenceTransformer: masked mean-pool + dense."""
    # TODO(synk): the real SentenceTransformer encoder (transformer stack) is not
    # reproduced here; this stub only provides deterministic [N, D] embeddings.
    mask = attention_mask[..., None].astype(token_embeddings.dtype)
    pooled = jnp.sum(token_embeddings * mask, axis=1) / jnp.maximum(
        jnp.sum(mask, axis=1), 1e-9
    )
    # Emitting bf16 halves the HBM bytes read by the (memory-bound) loss kernel.
    return (pooled @ params["w"] + params["b"]).astype(out_dtype)


if __name__ == "__main__":
    key = jax.random.PRNGKey(0)
    batch, seq, hidden, emb_dim = 8, 8, 32, 32
    temperature = 0.07

    k1, k2, k3, k4 = jax.random.split(key, 4)
    tok_anchor = jax.random.normal(k1, (batch, seq, hidden), jnp.float32)
    tok_other = jax.random.normal(k2, (batch, seq, hidden), jnp.float32)
    attn_mask = jnp.ones((batch, seq), jnp.float32)

    # Deterministic "model" parameters (synthetic, no checkpoint).
    params = {
        "w": jax.random.normal(k3, (hidden, emb_dim), jnp.float32) / jnp.sqrt(hidden),
        "b": jnp.zeros((emb_dim,), jnp.float32),
    }

    # labels[0] == 1, rest zero (as asserted in the PyTorch module; unused beyond asserts)
    labels = jnp.zeros((batch,), jnp.int32).at[0].set(1)
    assert int(labels[0]) == 1
    assert int(jnp.count_nonzero(labels[1:])) == 0

    # --- Test 1: small f32 path (kernel forced on) -----------------------------------
    rep_anchor = sentence_transformer_stub(params, tok_anchor, attn_mask)
    rep_other = sentence_transformer_stub(params, tok_other, attn_mask)
    loss = jax.block_until_ready(
        supcon_loss_pallas(rep_anchor, rep_other, temperature=temperature,
                           force_pallas=True))
    loss_ref = supcon_loss_ref(rep_anchor, rep_other, temperature)
    assert jnp.allclose(loss, loss_ref, rtol=1e-5, atol=1e-5), (loss, loss_ref)

    # --- Test 2: bf16 reps from the encoder (halved HBM traffic), kernel forced on ---
    rep_anchor_bf = sentence_transformer_stub(params, tok_anchor, attn_mask,
                                              out_dtype=jnp.bfloat16)
    rep_other_bf = sentence_transformer_stub(params, tok_other, attn_mask,
                                             out_dtype=jnp.bfloat16)
    loss_bf = jax.block_until_ready(
        supcon_loss_pallas(rep_anchor_bf, rep_other_bf, temperature=temperature,
                           force_pallas=True))
    loss_bf_ref = supcon_loss_ref(rep_anchor_bf, rep_other_bf, temperature)
    assert jnp.allclose(loss_bf, loss_bf_ref, rtol=1e-4, atol=1e-4), (loss_bf, loss_bf_ref)

    # --- Test 3: ragged N, two row-partitions, bf16, no padding anywhere -------------
    # Exercises: full (unmasked) tiles, the ragged masked tile, and a clamped
    # fully-out-of-range duplicate tile.
    n2, d2 = 300, 128
    ka, kb = jax.random.split(k4)
    big_a = jax.random.normal(ka, (n2, d2), jnp.float32).astype(jnp.bfloat16)
    big_b = jax.random.normal(kb, (n2, d2), jnp.float32).astype(jnp.bfloat16)
    loss2 = jax.block_until_ready(
        supcon_loss_pallas(big_a, big_b, temperature=temperature,
                           tile_rows=64, num_parts=2, force_pallas=True))
    loss2_ref = supcon_loss_ref(big_a, big_b, temperature)
    assert jnp.allclose(loss2, loss2_ref, rtol=1e-4, atol=1e-4), (loss2, loss2_ref)

    # --- Test 4: small-problem fast path (no pallas_call) ----------------------------
    loss_fast = jax.block_until_ready(
        supcon_loss_pallas(rep_anchor, rep_other, temperature=temperature))
    assert jnp.allclose(loss_fast, loss_ref, rtol=1e-5, atol=1e-5), (loss_fast, loss_ref)

    print("KERNEL_OK")
</pallas_src>

<mosaic_0001>
module attributes {stable_mosaic.version = 11 : i64} {
  func.func @_supcon_kernel(%arg0: i32, %arg1: i32, %arg2: memref<8x32xf32, #tpu.memory_space<vmem>>, %arg3: memref<8x32xf32, #tpu.memory_space<vmem>>, %arg4: memref<1x1xf32, #tpu.memory_space<vmem>>, %arg5: memref<1x1xf32, #tpu.memory_space<vmem>>, %arg6: memref<1x1xf32, #tpu.memory_space<vmem>>, %arg7: memref<1x1xf32, #tpu.memory_space<vmem>>, %arg8: memref<1x1xf32, #tpu.memory_space<vmem>>, %arg9: memref<1x1xf32, #tpu.memory_space<vmem>>) attributes {dimension_semantics = [#tpu.dimension_semantics<parallel>, #tpu.dimension_semantics<arbitrary>], iteration_bounds = array<i64: 1, 1>, scalar_prefetch = 0 : i64, scratch_operands = 3 : i64, tpu.core_type = #tpu.core_type<tc>, window_params = [{transform_indices = @transform_0, window_bounds = array<i64: 8, 32>}, {transform_indices = @transform_1, window_bounds = array<i64: 8, 32>}, {transform_indices = @transform_2, window_bounds = array<i64: 1, 1>}, {transform_indices = @transform_3, window_bounds = array<i64: 1, 1>}, {transform_indices = @transform_4, window_bounds = array<i64: 1, 1>}]} {
    %c0_i32 = arith.constant 0 : i32
    %0 = arith.cmpi eq, %arg1, %c0_i32 : i32
    %1 = arith.extui %0 : i1 to i32
    %c0_i32_0 = arith.constant 0 : i32
    %2 = arith.cmpi ne, %1, %c0_i32_0 : i32
    scf.if %2 {
      %cst_20 = arith.constant -1.000000e+30 : f32
      %34 = vector.broadcast %cst_20 : f32 to vector<1x1xf32>
      %c0_21 = arith.constant 0 : index
      %c0_22 = arith.constant 0 : index
      %35 = vector.load %arg7[%c0_21, %c0_22] : memref<1x1xf32, #tpu.memory_space<vmem>>, vector<1x1xf32>
      tpu.vector_store %arg7[%c0_21, %c0_22], %34 {strides = array<i32>} : memref<1x1xf32, #tpu.memory_space<vmem>>, vector<1x1xf32>,
      %cst_23 = arith.constant 0.000000e+00 : f32
      %36 = vector.broadcast %cst_23 : f32 to vector<1x1xf32>
      %c0_24 = arith.constant 0 : index
      %c0_25 = arith.constant 0 : index
      %37 = vector.load %arg8[%c0_24, %c0_25] : memref<1x1xf32, #tpu.memory_space<vmem>>, vector<1x1xf32>
      tpu.vector_store %arg8[%c0_24, %c0_25], %36 {strides = array<i32>} : memref<1x1xf32, #tpu.memory_space<vmem>>, vector<1x1xf32>,
      %cst_26 = arith.constant 0.000000e+00 : f32
      %38 = vector.broadcast %cst_26 : f32 to vector<1x1xf32>
      %c0_27 = arith.constant 0 : index
      %c0_28 = arith.constant 0 : index
      %39 = vector.load %arg9[%c0_27, %c0_28] : memref<1x1xf32, #tpu.memory_space<vmem>>, vector<1x1xf32>
      tpu.vector_store %arg9[%c0_27, %c0_28], %38 {strides = array<i32>} : memref<1x1xf32, #tpu.memory_space<vmem>>, vector<1x1xf32>,
    } else {
    }
    %c0 = arith.constant 0 : index
    %c0_1 = arith.constant 0 : index
    %3 = vector.load %arg2[%c0, %c0_1] : memref<8x32xf32, #tpu.memory_space<vmem>>, vector<8x32xf32>
    %c0_2 = arith.constant 0 : index
    %c0_3 = arith.constant 0 : index
    %4 = vector.load %arg3[%c0_2, %c0_3] : memref<8x32xf32, #tpu.memory_space<vmem>>, vector<8x32xf32>
    %5 = arith.mulf %3, %4 : vector<8x32xf32>
    %cst = arith.constant dense<0.000000e+00> : vector<8xf32>
    %6 = vector.multi_reduction <add>, %5, %cst [1] : vector<8x32xf32> to vector<8xf32>
    %7 = vector.shape_cast %6 : vector<8xf32> to vector<8x1xf32>
    %cst_4 = arith.constant 14.2857141 : f32
    %8 = vector.broadcast %cst_4 : f32 to vector<8x1xf32>
    %9 = arith.mulf %7, %8 : vector<8x1xf32>
    %c0_i32_5 = arith.constant 0 : i32
    %10 = arith.cmpi eq, %arg0, %c0_i32_5 : i32
    %c0_i32_6 = arith.constant 0 : i32
    %11 = arith.cmpi eq, %arg1, %c0_i32_6 : i32
    %12 = arith.andi %10, %11 : i1
    %13 = arith.extui %12 : i1 to i32
    %c0_i32_7 = arith.constant 0 : i32
    %14 = arith.cmpi ne, %13, %c0_i32_7 : i32
    scf.if %14 {
      %34 = vector.extract_strided_slice %9 {offsets = [0, 0], sizes = [1, 1], strides = [1, 1]} : vector<8x1xf32> to vector<1x1xf32>
      %c0_20 = arith.constant 0 : index
      %c0_21 = arith.constant 0 : index
      %35 = vector.load %arg9[%c0_20, %c0_21] : memref<1x1xf32, #tpu.memory_space<vmem>>, vector<1x1xf32>
      tpu.vector_store %arg9[%c0_20, %c0_21], %34 {strides = array<i32>} : memref<1x1xf32, #tpu.memory_space<vmem>>, vector<1x1xf32>,
    } else {
    }
    %c0_8 = arith.constant 0 : index
    %c0_9 = arith.constant 0 : index
    %15 = vector.load %arg7[%c0_8, %c0_9] : memref<1x1xf32, #tpu.memory_space<vmem>>, vector<1x1xf32>
    %cst_10 = arith.constant dense<0xFF800000> : vector<1xf32>
    %16 = vector.multi_reduction <maximumf>, %9, %cst_10 [0] : vector<8x1xf32> to vector<1xf32>
    %17 = vector.shape_cast %16 : vector<1xf32> to vector<1x1xf32>
    %18 = arith.maximumf %15, %17 : vector<1x1xf32>
    %19 = vector.broadcast %18 : vector<1x1xf32> to vector<8x1xf32>
    %20 = arith.subf %9, %19 : vector<8x1xf32>
    %21 = math.exp %20 : vector<8x1xf32>
    %c0_11 = arith.constant 0 : index
    %c0_12 = arith.constant 0 : index
    %22 = vector.load %arg8[%c0_11, %c0_12] : memref<1x1xf32, #tpu.memory_space<vmem>>, vector<1x1xf32>
    %23 = arith.subf %15, %18 : vector<1x1xf32>
    %24 = math.exp %23 : vector<1x1xf32>
    %25 = arith.mulf %22, %24 : vector<1x1xf32>
    %cst_13 = arith.constant dense<0.000000e+00> : vector<1xf32>
    %26 = vector.multi_reduction <add>, %21, %cst_13 [0] : vector<8x1xf32> to vector<1xf32>
    %27 = vector.shape_cast %26 : vector<1xf32> to vector<1x1xf32>
    %28 = arith.addf %25, %27 : vector<1x1xf32>
    %c0_14 = arith.constant 0 : index
    %c0_15 = arith.constant 0 : index
    %29 = vector.load %arg8[%c0_14, %c0_15] : memref<1x1xf32, #tpu.memory_space<vmem>>, vector<1x1xf32>
    tpu.vector_store %arg8[%c0_14, %c0_15], %28 {strides = array<i32>} : memref<1x1xf32, #tpu.memory_space<vmem>>, vector<1x1xf32>,
    %c0_16 = arith.constant 0 : index
    %c0_17 = arith.constant 0 : index
    %30 = vector.load %arg7[%c0_16, %c0_17] : memref<1x1xf32, #tpu.memory_space<vmem>>, vector<1x1xf32>
    tpu.vector_store %arg7[%c0_16, %c0_17], %18 {strides = array<i32>} : memref<1x1xf32, #tpu.memory_space<vmem>>, vector<1x1xf32>,
    %c0_i32_18 = arith.constant 0 : i32
    %31 = arith.cmpi eq, %arg1, %c0_i32_18 : i32
    %32 = arith.extui %31 : i1 to i32
    %c0_i32_19 = arith.constant 0 : i32
    %33 = arith.cmpi ne, %32, %c0_i32_19 : i32
    scf.if %33 {
      %c0_20 = arith.constant 0 : index
      %c0_21 = arith.constant 0 : index
      %34 = vector.load %arg7[%c0_20, %c0_21] : memref<1x1xf32, #tpu.memory_space<vmem>>, vector<1x1xf32>
      %c0_22 = arith.constant 0 : index
      %c0_23 = arith.constant 0 : index
      %35 = vector.load %arg4[%c0_22, %c0_23] : memref<1x1xf32, #tpu.memory_space<vmem>>, vector<1x1xf32>
      tpu.vector_store %arg4[%c0_22, %c0_23], %34 {strides = array<i32>} : memref<1x1xf32, #tpu.memory_space<vmem>>, vector<1x1xf32>,
      %c0_24 = arith.constant 0 : index
      %c0_25 = arith.constant 0 : index
      %36 = vector.load %arg8[%c0_24, %c0_25] : memref<1x1xf32, #tpu.memory_space<vmem>>, vector<1x1xf32>
      %c0_26 = arith.constant 0 : index
      %c0_27 = arith.constant 0 : index
      %37 = vector.load %arg5[%c0_26, %c0_27] : memref<1x1xf32, #tpu.memory_space<vmem>>, vector<1x1xf32>
      tpu.vector_store %arg5[%c0_26, %c0_27], %36 {strides = array<i32>} : memref<1x1xf32, #tpu.memory_space<vmem>>, vector<1x1xf32>,
      %c0_28 = arith.constant 0 : index
      %c0_29 = arith.constant 0 : index
      %38 = vector.load %arg9[%c0_28, %c0_29] : memref<1x1xf32, #tpu.memory_space<vmem>>, vector<1x1xf32>
      %c0_30 = arith.constant 0 : index
      %c0_31 = arith.constant 0 : index
      %39 = vector.load %arg6[%c0_30, %c0_31] : memref<1x1xf32, #tpu.memory_space<vmem>>, vector<1x1xf32>
      tpu.vector_store %arg6[%c0_30, %c0_31], %38 {strides = array<i32>} : memref<1x1xf32, #tpu.memory_space<vmem>>, vector<1x1xf32>,
    } else {
    }
    return
  }
  func.func @transform_0(%arg0: i32, %arg1: i32) -> (i32, i32) {
    %c1_i32 = arith.constant 1 : i32
    %0 = arith.muli %arg0, %c1_i32 : i32
    %1 = arith.addi %0, %arg1 : i32
    %c0_i32 = arith.constant 0 : i32
    %2 = arith.minsi %1, %c0_i32 : i32
    %c0_i32_0 = arith.constant 0 : i32
    %c0_i32_1 = arith.constant 0 : i32
    return %2, %c0_i32_0 : i32, i32
  }
  func.func @transform_1(%arg0: i32, %arg1: i32) -> (i32, i32) {
    %c1_i32 = arith.constant 1 : i32
    %0 = arith.muli %arg0, %c1_i32 : i32
    %1 = arith.addi %0, %arg1 : i32
    %c0_i32 = arith.constant 0 : i32
    %2 = arith.minsi %1, %c0_i32 : i32
    %c0_i32_0 = arith.constant 0 : i32
    %c0_i32_1 = arith.constant 0 : i32
    return %2, %c0_i32_0 : i32, i32
  }
  func.func @transform_2(%arg0: i32, %arg1: i32) -> (i32, i32) {
    %c0_i32 = arith.constant 0 : i32
    %c0_i32_0 = arith.constant 0 : i32
    return %arg0, %c0_i32 : i32, i32
  }
  func.func @transform_3(%arg0: i32, %arg1: i32) -> (i32, i32) {
    %c0_i32 = arith.constant 0 : i32
    %c0_i32_0 = arith.constant 0 : i32
    return %arg0, %c0_i32 : i32, i32
  }
  func.func @transform_4(%arg0: i32, %arg1: i32) -> (i32, i32) {
    %c0_i32 = arith.constant 0 : i32
    %c0_i32_0 = arith.constant 0 : i32
    return %arg0, %c0_i32 : i32, i32
  }
}

</mosaic_0001>

<bundles_post_ra>
// kernel: tpu_custom_call.1
= control target key start
LH: loop header
LB: loop body
LE: loop exit
PB: predicated region body
PF: predicated region fallthrough
CT: control target
= control target key end

     0   :  { %10 = vsyncpa [#allocation6], 0  ;;  %s344_s0 = inlined_call_operand.hbm [shape: f32[8,32], index: 0, kind: input, shape index: {}]   ;;  %s345_s1 = inlined_call_operand.hbm [shape: f32[8,32], index: 1, kind: input, shape index: {}]   ;;  %s346_s2 = inlined_call_operand.hbm [shape: f32[1,1], index: 2, kind: output, shape index: {0}]   ;;  %s347_s3 = inlined_call_operand.hbm [shape: f32[1,1], index: 3, kind: output, shape index: {1}]   ;;  %s348_s4 = inlined_call_operand.hbm [shape: f32[1,1], index: 4, kind: output, shape index: {2}]  }
   0x1   :  { %11 = vsyncpa [#allocation9], 0 }
   0x2   :  { %12 = vsyncpa [#allocation7], 0 }
   0x3   :  { %13 = vsyncpa [#allocation12], 0  ;;  %s288_s15 = smov [#allocation5]   ;;  %s289_s17 = smov [#allocation8]  }
   0x4   :  { %s25_s16 = sshll.u32 %s288_s15, 4  ;;  %s40_s18 = sshll.u32 %s289_s17, 4  ;;  %s26_s16 = int_to_ptr.vmem [resolvable:$true] %s25_s16  ;;  %s41_s18 = int_to_ptr.vmem [resolvable:$true] %s40_s18 }
   0x5   :  { %s188_s19 = scalar_lea.vmem %s26_s16, 128  ;;  %p193_p1 = scmp.lt.s32.totalorder %s26_s16, %s26_s16 }
   0x6   :  { %p189_p0 = scmp.ne.s32.totalorder %s26_s16, %s188_s19  ;;  %p194_p2 = scmp.lt.s32.totalorder %s188_s19, %s188_s19 }
   0x8   :  { %p195_p3 = por %p194_p2, %p193_p1 }
   0xa   :  { %p196_p4 = pnand %p195_p3, %p189_p0 }
   0xc   :  { %199 = shalt.err (!%p196_p4)
}
   0xd   :  { %28 = dma.hbm_to_vmem [thread:$0]  %s344_s0, 128, %s26_s16, [#allocation6]  }
   0xe   :  { %s208_s22 = scalar_lea.vmem %s41_s18, 128  ;;  %p213_p6 = scmp.lt.s32.totalorder %s41_s18, %s41_s18 }
   0xf   :  { %p209_p5 = scmp.ne.s32.totalorder %s41_s18, %s208_s22  ;;  %p214_p7 = scmp.lt.s32.totalorder %s208_s22, %s208_s22 }
  0x11   :  { %p215_p8 = por %p214_p7, %p213_p6 }
  0x13   :  { %p216_p9 = pnand %p215_p8, %p209_p5 }
  0x15   :  { %219 = shalt.err (!%p216_p9)
}
  0x16   :  { %43 = dma.hbm_to_vmem [thread:$0]  %s345_s1, 128, %s41_s18, [#allocation9]  }
  0x17   :  { %280 = dma.done.wait [#allocation6], 128  }
  0x18   :  { %281 = vsyncadd [#allocation6], 4294967168 }
  0x19   :  { %282 = dma.done.wait [#allocation9], 128  }
  0x1a   :  { %283 = vsyncadd [#allocation9], 4294967168  ;;  %vm60_vm0 = vcmask 0   ;;  %v290_v0 = vmov -1e+30   ;;  %v291_v1 = vmov 0.0   ;;  %v88_v10 = vlaneseq }
  0x1b   :  { %61 = vst.msk [vmem:[#allocation2] sm:$0x1] %vm60_vm0, %v290_v0  ;;  %62 = vst.msk [vmem:[#allocation3] sm:$0x1] %vm60_vm0, %v291_v1  ;;  %v64_v2 = vld [vmem:[#allocation5] sm:$0xff]  ;;  %v65_v3 = vld [vmem:[#allocation8] sm:$0xff] }
  0x1c   :  { %63 = vst.msk [vmem:[#allocation4] sm:$0x1] %vm60_vm0, %v291_v1  ;;  %vm67_vm1 = vcmask 261120   ;;  %v66_v4 = vmul.f32 %v65_v3, %v64_v2  ;;  %v89_v13 = vshrl.u32 %v88_v10, 7  ;;  %s292_s0 = smov [#allocation10]  }
  0x1d   :  { %s128_s1 = sshll.u32 %s292_s0, 4  ;;  %s129_s1 = int_to_ptr.vmem [resolvable:$true] %s128_s1 }
  0x1e   :  { %v68_v5 = vsel %vm67_vm1, %v66_v4, 0.0  ;;  %v90_v18 = vsub.s32 0, %v89_v13  ;;  %s220_s25 = scalar_lea.vmem %s129_s1, 16  ;;  %s224_s26 = scalar_lea.vmem %s129_s1, 32 }
  0x1f   :  { %69 = vadd.xlane.f32.xlu0 %v68_v5  ;;  %p221_p10 = scmp.ne.s32.totalorder %s129_s1, %s220_s25  ;;  %p225_p11 = scmp.lt.s32.totalorder %s129_s1, %s129_s1 }
  0x20   :  { %p226_p12 = scmp.lt.s32.totalorder %s224_s26, %s220_s25 }
  0x22   :  { %v79_v16 = vld [vmem:[#allocation2] sm:$0x1]  ;;  %p227_p13 = por %p226_p12, %p225_p11 }
  0x24   :  { %p228_p0 = pnand %p227_p13, %p221_p10 }
  0xa8   :  { %v70_v6 = vpop.xlane.xlu0 %69 }
  0xa9   :  { %v71_v7 = vmul.f32 14.285714, %v70_v6 }
  0xab   :  { %78 = vst.msk [vmem:[#allocation4] sm:$0x1] %vm60_vm0, %v71_v7  ;;  %v80_v8 = vrot.slane %v71_v7, 4 }
  0xad   :  { %v81_v9 = vmax.f32 %v71_v7, %v80_v8 }
  0xaf   :  { %v82_v11 = vrot.slane %v81_v9, 2 }
  0xb1   :  { %v83_v12 = vmax.f32 %v81_v9, %v82_v11 }
  0xb2   :  { %v120_v14 = vld [vmem:[#allocation4] sm:$0x1] }
  0xb3   :  { %v84_v15 = vrot.slane %v83_v12, 1  ;;  %121 = vst.msk [vmem:[#allocation13] sm:$0x1] %vm60_vm0, %v120_v14 }
  0xb5   :  { %v85_v17 = vmax.f32 %v83_v12, %v84_v15 }
  0xb7   :  { %v86_v19 = vmax.f32 %v79_v16, %v85_v17 }
  0xb9   :  { %v91_v20 = vrot.slane %v86_v19, %v90_v18  ;;  %112 = vst.msk [vmem:[#allocation2] sm:$0x1] %vm60_vm0, %v86_v19  ;;  %v97_v23 = vsub.f32 %v79_v16, %v86_v19 }
  0xbb   :  { %v93_v21 = vsub.f32 %v71_v7, %v91_v20 }
  0xbd   :  { %v94_v22 = vmul.f32 1.442695, %v93_v21 }
  0xbf   :  { %176 = vpow2.f32 %v94_v22 }
  0xc0   :  { %v116_v24 = vld [vmem:[#allocation2] sm:$0x1] }
  0xc1   :  { %117 = vst.msk [vmem:[#allocation10] sm:$0x1] %vm60_vm0, %v116_v24 }
  0xc2   :  { %231 = shalt.err (!%p228_p0)
}
  0xc3   :  { %131 = dma.vmem_to_hbm [thread:$0]  %s129_s1, 16, %s346_s2, [#allocation7]   ;;  %v98_v25 = vmul.f32 1.442695, %v97_v23  ;;  %vm101_vm2 = vcmask 7168  }
  0xc4   :  { %v96_v33 = vld [vmem:[#allocation3] sm:$0x1]  ;;  %s293_s29 = smov [#allocation11]   ;;  %s294_s2 = smov [#allocation13]  }
  0xc5   :  { %178 = vpow2.f32 %v98_v25  ;;  %s138_s30 = sshll.u32 %s293_s29, 4  ;;  %s148_s5 = sshll.u32 %s294_s2, 4  ;;  %s139_s30 = int_to_ptr.vmem [resolvable:$true] %s138_s30  ;;  %s149_s5 = int_to_ptr.vmem [resolvable:$true] %s148_s5 }
  0xc6   :  { %s240_s6 = scalar_lea.vmem %s139_s30, 16  ;;  %s244_s7 = scalar_lea.vmem %s139_s30, 32 }
  0xc7   :  { %p241_p1 = scmp.ne.s32.totalorder %s139_s30, %s240_s6  ;;  %p245_p2 = scmp.lt.s32.totalorder %s139_s30, %s139_s30 }
  0xc8   :  { %p246_p3 = scmp.lt.s32.totalorder %s244_s7, %s240_s6 }
  0xca   :  { %p247_p4 = por %p246_p3, %p245_p2 }
  0xcc   :  { %v177_v26 = vpop.eup %176  ;;  %p248_p5 = pnand %p247_p4, %p241_p1 }
  0xcd   :  { %v102_v27 = vsel %vm101_vm2, %v177_v26, 0.0 }
  0xce   :  { %v103_v28 = vrot.slane %v102_v27, 4 }
  0xd0   :  { %v104_v29 = vadd.f32 %v103_v28, %v102_v27 }
  0xd2   :  { %v105_v30 = vrot.slane %v104_v29, 2  ;;  %v179_v32 = vpop.eup %178 }
  0xd3   :  { %v100_v35 = vmul.f32 %v179_v32, %v96_v33 }
  0xd4   :  { %v106_v31 = vadd.f32 %v105_v30, %v104_v29 }
  0xd6   :  { %v107_v34 = vrot.slane %v106_v31, 1 }
  0xd8   :  { %v108_v36 = vadd.f32 %v107_v34, %v106_v31 }
  0xda   :  { %v109_v37 = vadd.f32 %v108_v36, %v100_v35 }
  0xdc   :  { %111 = vst.msk [vmem:[#allocation3] sm:$0x1] %vm60_vm0, %v109_v37 }
  0xe3   :  { %v118_v38 = vld [vmem:[#allocation3] sm:$0x1] }
  0xe4   :  { %119 = vst.msk [vmem:[#allocation11] sm:$0x1] %vm60_vm0, %v118_v38 }
  0xe5   :  { %251 = shalt.err (!%p248_p5)
}
  0xe6   :  { %141 = dma.vmem_to_hbm [thread:$0]  %s139_s30, 16, %s347_s3, [#allocation12]  }
  0xe7   :  { %s260_s10 = scalar_lea.vmem %s149_s5, 16  ;;  %s264_s11 = scalar_lea.vmem %s149_s5, 32 }
  0xe8   :  { %p261_p6 = scmp.ne.s32.totalorder %s149_s5, %s260_s10  ;;  %p265_p7 = scmp.lt.s32.totalorder %s149_s5, %s149_s5 }
  0xe9   :  { %p266_p8 = scmp.lt.s32.totalorder %s264_s11, %s260_s10 }
  0xeb   :  { %p267_p9 = por %p266_p8, %p265_p7 }
  0xed   :  { %p268_p10 = pnand %p267_p9, %p261_p6 }
  0xef   :  { %271 = shalt.err (!%p268_p10)
}
  0xf0   :  { %151 = dma.vmem_to_hbm [thread:$0]  %s149_s5, 16, %s348_s4, [#allocation12]  }
  0xf1   :  { %284 = dma.done.wait [#allocation7], 16  }
  0xf2   :  { %285 = vsyncadd [#allocation7], 4294967280 }
  0xf3   :  { %286 = dma.done.wait [#allocation12], 32  }
  0xf4   :  { %287 = vsyncadd [#allocation12], 4294967264 }
  0xf5   :  { %161 = vsyncpa [#allocation6], 1 }
  0xf6   :  { %162 = vsyncpa [#allocation9], 1 }
  0xf7   :  { %163 = vsyncpa [#allocation7], 1 }
  0xf8   :  { %164 = vsyncpa [#allocation12], 1 }

</bundles_post_ra>
